<compile_context>
chip_gen: v5e
topology: v5e:2x2
jax: 0.10.0
libtpu: 0.0.40
codegen_flags: <defaults>
</compile_context>

<pallas_src>
import functools

import jax
import jax.numpy as jnp
from jax.experimental import pallas as pl
from jax.experimental.pallas import tpu as pltpu

LANES = 128                              # vreg lane width
TARGET_TILE_BYTES = 4 * 1024 * 1024      # ~4 MiB per input buffer per grid step
VMEM_LIMIT_BYTES = 32 * 1024 * 1024      # 2 inputs x 2 buffers x 4 MiB + headroom


def _round_up(x, m):
    return ((x + m - 1) // m) * m


def _mse_partial_kernel(x_ref, y_ref, o_ref, *, rows, row_tile, needs_mask):
    """One grid step: partial sum of (x - y)^2 over its (row_tile, C) tile.

    Writes an (8, C) partial sum reduced along the row axis only; the final
    cross-block reduction and the divide by n happen in the wrapper.
    """
    x = x_ref[...].astype(jnp.float32)
    y = y_ref[...].astype(jnp.float32)
    d = x - y
    sq = d * d                                            # (row_tile, C), f32

    c = sq.shape[-1]

    def _reduce_rows(v):
        if row_tile % 8 == 0:
            # Groups of 8 rows align with native f32 sublane tiling -> pure
            # vreg-wise VALU adds, no per-step cross-lane XLU reduce.
            return v.reshape(row_tile // 8, 8, c).sum(axis=0)
        # Tiny full-dim block (rare): reduce to one row and place it in
        # sublane 0 of the (8, C) output tile.
        partial = jnp.sum(v, axis=0, keepdims=True)       # (1, C)
        row0 = jax.lax.broadcasted_iota(jnp.int32, (8, c), 0) == 0
        return jnp.where(row0, partial, jnp.float32(0.0))

    if needs_mask:
        i = pl.program_id(0)
        last = pl.num_programs(0) - 1

        @pl.when(i != last)
        def _():
            o_ref[...] = _reduce_rows(sq)

        @pl.when(i == last)
        def _():
            # Mask rows past the end of the array (ragged last block only).
            # jnp.where selects away garbage (possibly NaN/Inf) rows.
            row_idx = jax.lax.broadcasted_iota(jnp.int32, sq.shape, 0)
            valid = (i * row_tile + row_idx) < rows
            o_ref[...] = _reduce_rows(jnp.where(valid, sq, jnp.float32(0.0)))
    else:
        o_ref[...] = _reduce_rows(sq)


def mse_loss(x, y, *, reduction="mean"):
    """Pallas implementation of F.mse_loss(x, y, reduction='mean')."""
    assert reduction == "mean", "only 'mean' reduction is implemented"
    assert x.shape == y.shape, "input and target must have identical shapes"

    n = x.size
    out_dtype = x.dtype if jnp.issubdtype(x.dtype, jnp.floating) else jnp.float32
    if n == 0:
        return jnp.asarray(jnp.nan, out_dtype)   # torch: mean over empty -> nan

    itemsize = jnp.dtype(x.dtype).itemsize
    # Sublane multiple keeping packed dtypes on a legal input layout
    # (f32 -> 8, bf16 -> 16, int8/fp8 -> 32).
    sub = 8 * max(1, 4 // itemsize)

    tail_sum = None

    if x.ndim >= 2:
        # Block over the native trailing dim; collapsing only the leading dims
        # is layout-compatible, so no hidden full-tensor HBM relayout copy.
        C = x.shape[-1]
        R = n // C
        x2d = x.reshape(R, C)
        y2d = y.reshape(R, C)
    else:
        # 0-D / 1-D: a lane-dense (rows, 128) view of a flat buffer.
        n_al = (n // LANES) * LANES
        if n_al == 0:
            d = x.astype(jnp.float32) - y.astype(jnp.float32)
            return (jnp.sum(d * d) / jnp.float32(n)).astype(out_dtype)
        x1 = x.reshape(-1)
        y1 = y.reshape(-1)
        if n_al != n:
            # TODO(synk): fold the <128-element tail of ragged 1-D inputs into
            # the kernel's last block (currently a tiny wrapper-side sum).
            xt = x1[n_al:].astype(jnp.float32)
            yt = y1[n_al:].astype(jnp.float32)
            tail_sum = jnp.sum((xt - yt) ** 2)
            x1 = x1[:n_al]
            y1 = y1[:n_al]
        C = LANES
        R = n_al // LANES
        x2d = x1.reshape(R, C)
        y2d = y1.reshape(R, C)

    # ---- Bytes-based, dtype-aware row tile (~4 MiB per input buffer) -------
    # TODO(synk): extremely large trailing dims (>~1M elements) would also
    # need column tiling; not implemented.
    c_pad = _round_up(C, LANES)             # lanes are padded to 128 in VMEM
    bytes_per_row = c_pad * itemsize
    budget_rows = max(sub, (TARGET_TILE_BYTES // bytes_per_row) // sub * sub)

    if R >= 2 * sub:
        row_tile = min(budget_rows, (R // sub) * sub)
        if pl.cdiv(R, row_tile) == 1:
            # Mid-size tensor fits one tile: split into 2 blocks so both v7x
            # TensorCores (megacore) can stream from HBM concurrently.
            row_tile = _round_up(pl.cdiv(R, 2), sub)
    else:
        row_tile = R                         # tiny: full-dim block

    num_blocks = pl.cdiv(R, row_tile)
    needs_mask = (R % row_tile) != 0

    kernel = functools.partial(
        _mse_partial_kernel, rows=R, row_tile=row_tile, needs_mask=needs_mask)

    bytes_accessed = 2 * n * itemsize + num_blocks * 8 * C * 4

    # If DMA is still exposed on v7x after the larger tiles, sweeping
    # pipeline_mode=pl.Buffered(3) on the input BlockSpecs is the next knob
    # (measure before keeping).
    partials = pl.pallas_call(
        kernel,
        out_shape=jax.ShapeDtypeStruct((num_blocks * 8, C), jnp.float32),
        grid_spec=pltpu.PrefetchScalarGridSpec(
            num_scalar_prefetch=0,
            grid=(num_blocks,),
            in_specs=[
                pl.BlockSpec((row_tile, C), lambda i: (i, 0)),
                pl.BlockSpec((row_tile, C), lambda i: (i, 0)),
            ],
            out_specs=pl.BlockSpec((8, C), lambda i: (i, 0)),
        ),
        compiler_params=pltpu.CompilerParams(
            dimension_semantics=("parallel",),
            vmem_limit_bytes=VMEM_LIMIT_BYTES,
        ),
        cost_estimate=pl.CostEstimate(
            flops=3 * n,
            transcendentals=0,
            bytes_accessed=bytes_accessed,
        ),
    )(x2d, y2d)

    total = jnp.sum(partials)
    if tail_sum is not None:
        total = total + tail_sum
    return (total / jnp.float32(n)).astype(out_dtype)


if __name__ == "__main__":
    key = jax.random.PRNGKey(0)
    kx, ky = jax.random.split(key)

    # Small shapes consistent with a typical NCHW use of MSELoss.
    shape = (2, 4, 16, 16)
    x = jax.random.normal(kx, shape, dtype=jnp.float32)
    y = jax.random.normal(ky, shape, dtype=jnp.float32)

    loss = mse_loss(x, y)
    loss = jax.block_until_ready(loss)

    # Reference check against plain JAX.
    ref = jnp.mean((x - y) ** 2)
    assert jnp.allclose(loss, ref, rtol=1e-5, atol=1e-6), (loss, ref)

    print("KERNEL_OK")
</pallas_src>

<mosaic_0001>
module attributes {stable_mosaic.version = 11 : i64} {
  func.func @_mse_partial_kernel(%arg0: i32, %arg1: memref<64x16xf32, #tpu.memory_space<vmem>>, %arg2: memref<64x16xf32, #tpu.memory_space<vmem>>, %arg3: memref<8x16xf32, #tpu.memory_space<vmem>>) attributes {dimension_semantics = [#tpu.dimension_semantics<parallel>], iteration_bounds = array<i64: 2>, scalar_prefetch = 0 : i64, scratch_operands = 0 : i64, tpu.core_type = #tpu.core_type<tc>, window_params = [{transform_indices = @transform_0, window_bounds = array<i64: 64, 16>}, {transform_indices = @transform_1, window_bounds = array<i64: 64, 16>}, {transform_indices = @transform_2, window_bounds = array<i64: 8, 16>}]} {
    %c0 = arith.constant 0 : index
    %c0_0 = arith.constant 0 : index
    %0 = vector.load %arg1[%c0, %c0_0] : memref<64x16xf32, #tpu.memory_space<vmem>>, vector<64x16xf32>
    %c0_1 = arith.constant 0 : index
    %c0_2 = arith.constant 0 : index
    %1 = vector.load %arg2[%c0_1, %c0_2] : memref<64x16xf32, #tpu.memory_space<vmem>>, vector<64x16xf32>
    %2 = arith.subf %0, %1 : vector<64x16xf32>
    %3 = arith.mulf %2, %2 : vector<64x16xf32>
    %4 = vector.shape_cast %3 : vector<64x16xf32> to vector<8x8x16xf32>
    %cst = arith.constant dense<0.000000e+00> : vector<8x16xf32>
    %5 = vector.multi_reduction <add>, %4, %cst [0] : vector<8x8x16xf32> to vector<8x16xf32>
    %c0_3 = arith.constant 0 : index
    %c0_4 = arith.constant 0 : index
    %6 = vector.load %arg3[%c0_3, %c0_4] : memref<8x16xf32, #tpu.memory_space<vmem>>, vector<8x16xf32>
    tpu.vector_store %arg3[%c0_3, %c0_4], %5 {strides = array<i32>} : memref<8x16xf32, #tpu.memory_space<vmem>>, vector<8x16xf32>,
    return
  }
  func.func @transform_0(%arg0: i32) -> (i32, i32) {
    %c0_i32 = arith.constant 0 : i32
    %c0_i32_0 = arith.constant 0 : i32
    return %arg0, %c0_i32 : i32, i32
  }
  func.func @transform_1(%arg0: i32) -> (i32, i32) {
    %c0_i32 = arith.constant 0 : i32
    %c0_i32_0 = arith.constant 0 : i32
    return %arg0, %c0_i32 : i32, i32
  }
  func.func @transform_2(%arg0: i32) -> (i32, i32) {
    %c0_i32 = arith.constant 0 : i32
    %c0_i32_0 = arith.constant 0 : i32
    return %arg0, %c0_i32 : i32, i32
  }
}

</mosaic_0001>

<bundles_post_ra>
// kernel: tpu_custom_call.1
= control target key start
LH: loop header
LB: loop body
LE: loop exit
PB: predicated region body
PF: predicated region fallthrough
CT: control target
= control target key end

     0   :  { %7 = vsyncpa [#allocation3], 0  ;;  %s529_s0 = inlined_call_operand.vmem [shape: f32[128,16], index: 0, kind: input, shape index: {}]   ;;  %s530_s1 = inlined_call_operand.vmem [shape: f32[128,16], index: 1, kind: input, shape index: {}]   ;;  %s531_s2 = inlined_call_operand.hbm [shape: f32[16,16], index: 2, kind: output, shape index: {}]  }
   0x1   :  { %9 = vsyncpa [#allocation3 + $0x1], 0  ;;  %s433_s9 = smov 0   ;;  %s435_s10 = smov 0  }
   0x2   :  { %s437_s11 = smov 0   ;;  %s439_s12 = smov 0  }
   0x3 LB: > { %s301_s13 = sadd.s32 4294967295, %s416_s12   ;;  %s302_s14 = sadd.s32 4294967294, %s416_s12   ;;  %s416_s12 = sphi %s439_s12, %s537_s12   ;;  %s412_s11 = sphi %s437_s11, %s536_s11   ;;  %s408_s10 = sphi %s435_s10, %s535_s10   ;;  %s404_s9 = sphi %s433_s9, %s534_s9  }
   0x4   : > { %s456_s15 = sadd.s32 1, %s416_s12   ;;  %s74_s16 = sadd.s32 1, %s412_s11 }
   0x5   : > { %s71_s17 = ssub.s32 %s416_s12, %s456_s15  ;;  %p84_p0 = scmp.ne.s32.totalorder %s412_s11, %s408_s10 }
   0x6   : > { %p72_p1 = scmp.eq.s32.totalorder %s71_s17, 0  ;;  %p85_p2 = scmp.eq.s32.totalorder %s301_s13, 1 }
   0x7   : > { %p90_p3 = scmp.ne.s32.totalorder %s408_s10, %s404_s9  ;;  %p91_p4 = scmp.eq.s32.totalorder %s302_s14, 1 }
   0x8   : > { %s466_s18 = scalar_select %p72_p1, %s412_s11, %s74_s16  }
   0x9   : > { %p468_p5 = por %p85_p2, %p84_p0  ;;  %p472_p6 = por %p91_p4, %p90_p3 }
   0xa   : > { %p305_p7 = scmp.ge.s32.totalorder %s416_s12, 1  ;;  %p127_p8 = scmp.lt.s32.totalorder %s416_s12, 3 }
   0xc   : > { %p128_p9 = pnand %p305_p7, %p127_p8 }
   0xd   : > { %s478_s21 = sshll.u32 (!%p128_p9), %s301_s13, 3  ;;  %s151_s30 = sand.u32 (!%p128_p9), 1, %s408_s10  }
   0xe   : > { %131 = sbr.rel (%p128_p9) target bundleno = 48 (0x30), region = 28  ;;  %p155_p10 = scmp.lt.s32.totalorder (!%p128_p9), %s478_s21, 15 }
   0xf   : > { %s306_s3 = sshll.u32 (!%p128_p9), %s151_s30, 3  ;;  %s226_s6 = scalar_lea.hbm (!%p128_p9), %s531_s2, %s478_s21 }
  0x10   : > { %s153_s7 = scalar_lea.vmem (!%p128_p9), [#allocation2], %s306_s3  ;;  %s230_s13 = sshll.u32 (!%p128_p9), %s226_s6, 4  ;;  %s231_s13 = int_to_ptr.hbm [resolvable:$true] %s230_s13 }
  0x11   : > { %s228_s8 = sshll.u32 (!%p128_p9), %s153_s7, 4  ;;  %s216_s14 = scalar_lea.sflag (!%p128_p9), [#allocation3], %s151_s30  ;;  %s229_s8 = int_to_ptr.vmem [resolvable:$true] %s228_s8 }
  0x12   : > { %s368_s16 = sshra.s32 (!%p128_p9), %s231_s13, 4  ;;  %s369_s16 = int_to_ptr.hbm [resolvable:$true] %s368_s16 }
  0x13   : > { %s156_s22 = scalar_select %p155_p10, %s478_s21, 15  ;;  %vm198_vm0 = vcmask 130048  }
  0x14   : > { %s370_s17 = scalar_lea.hbm %s369_s16, 8  ;;  %p375_p0 = scmp.lt.s32.totalorder %s369_s16, %s531_s2 }
  0x15   : > { %s308_s23 = sshll.u32 %s156_s22, 3  ;;  %p371_p11 = scmp.ne.s32.totalorder %s369_s16, %s370_s17 }
  0x16   : > { %s158_s26 = scalar_lea.vmem %s529_s0, %s308_s23  ;;  %s164_s29 = scalar_lea.vmem %s530_s1, %s308_s23 }
  0x17   : > { %v166_v0 = vld [vmem:[%s158_s26] sm:$0xff]  ;;  %v167_v1 = vld [vmem:[%s158_s26 + $0x8] sm:$0xff]  ;;  %v168_v2 = vld [vmem:[%s158_s26 + $0x10] sm:$0xff]  ;;  %p372_p12 = pnand %p371_p11, %p468_p5  ;;  %s374_s23 = scalar_lea.hbm %s531_s2, 16 }
  0x18   : > { %v169_v3 = vld [vmem:[%s158_s26 + $0x18] sm:$0xff]  ;;  %v170_v4 = vld [vmem:[%s158_s26 + $0x20] sm:$0xff]  ;;  %v171_v5 = vld [vmem:[%s158_s26 + $0x28] sm:$0xff]  ;;  %p376_p1 = scmp.lt.s32.totalorder %s374_s23, %s370_s17 }
  0x19   : > { %v174_v6 = vld [vmem:[%s164_s29] sm:$0xff]  ;;  %v175_v7 = vld [vmem:[%s164_s29 + $0x8] sm:$0xff]  ;;  %v176_v8 = vld [vmem:[%s164_s29 + $0x10] sm:$0xff]  ;;  %p373_p13 = pneg %p372_p12 }
  0x1a   : > { %v177_v9 = vld [vmem:[%s164_s29 + $0x18] sm:$0xff]  ;;  %v182_v10 = vsub.f32 %v166_v0, %v174_v6  ;;  %v178_v11 = vld [vmem:[%s164_s29 + $0x20] sm:$0xff]  ;;  %v179_v12 = vld [vmem:[%s164_s29 + $0x28] sm:$0xff]  ;;  %v183_v13 = vsub.f32 %v167_v1, %v175_v7  ;;  %v184_v14 = vsub.f32 %v168_v2, %v176_v8  ;;  %p377_p2 = por %p376_p1, %p375_p0 }
  0x1b   : > { %v185_v15 = vsub.f32 %v169_v3, %v177_v9  ;;  %v172_v16 = vld [vmem:[%s158_s26 + $0x30] sm:$0xff]  ;;  %v186_v18 = vsub.f32 %v170_v4, %v178_v11  ;;  %v187_v20 = vsub.f32 %v171_v5, %v179_v12  ;;  %v173_v24 = vld [vmem:[%s158_s26 + $0x38] sm:$0xff] }
  0x1c   : > { %v180_v17 = vld [vmem:[%s164_s29 + $0x30] sm:$0xff]  ;;  %v190_v19 = vmul.f32 %v182_v10, %v182_v10  ;;  %v191_v21 = vmul.f32 %v183_v13, %v183_v13  ;;  %v192_v22 = vmul.f32 %v184_v14, %v184_v14  ;;  %v181_v25 = vld [vmem:[%s164_s29 + $0x38] sm:$0xff]  ;;  %p378_p3 = pnand %p377_p2, %p373_p13 }
  0x1d   : > { %v193_v23 = vmul.f32 %v185_v15, %v185_v15  ;;  %v188_v27 = vsub.f32 %v172_v16, %v180_v17  ;;  %v194_v28 = vmul.f32 %v186_v18, %v186_v18  ;;  %v189_v32 = vsub.f32 %v173_v24, %v181_v25 }
  0x1e   : > { %v199_v26 = vsel %vm198_vm0, %v190_v19, 0.0  ;;  %v200_v29 = vsel %vm198_vm0, %v191_v21, 0.0  ;;  %v202_v30 = vsel %vm198_vm0, %v192_v22, 0.0  ;;  %v195_v33 = vmul.f32 %v187_v20, %v187_v20 }
  0x1f   : > { %v201_v31 = vadd.f32 %v200_v29, %v199_v26  ;;  %v204_v34 = vsel %vm198_vm0, %v193_v23, 0.0  ;;  %v196_v36 = vmul.f32 %v188_v27, %v188_v27  ;;  %v206_v37 = vsel %vm198_vm0, %v194_v28, 0.0 }
  0x20   : > { %v197_v39 = vmul.f32 %v189_v32, %v189_v32  ;;  %v208_v40 = vsel %vm198_vm0, %v195_v33, 0.0 }
  0x21   : > { %v203_v35 = vadd.f32 %v202_v30, %v201_v31  ;;  %v210_v42 = vsel %vm198_vm0, %v196_v36, 0.0 }
  0x22   : > { %v212_v44 = vsel %vm198_vm0, %v197_v39, 0.0 }
  0x23   : > { %v205_v38 = vadd.f32 %v204_v34, %v203_v35 }
  0x25   : > { %v207_v41 = vadd.f32 %v206_v37, %v205_v38 }
  0x27   : > { %v209_v43 = vadd.f32 %v208_v40, %v207_v41 }
  0x29   : > { %v211_v45 = vadd.f32 %v210_v42, %v209_v43 }
  0x2b   : > { %v213_v46 = vadd.f32 %v212_v44, %v211_v45 }
  0x2d   : > { %214 = vst.msk [vmem:[%s153_s7] sm:$0xff] %vm198_vm0, %v213_v46 }
  0x2e   : > { %381 = shalt.err (!%p378_p3)
}
  0x2f   : > { %315 = dma.vmem_to_hbm [thread:$0]  (%p468_p5), %s229_s8, 128, %s231_s13, %s216_s14  }
  0x30 PF: > { %p321_p4 = scmp.ge.s32.totalorder %s416_s12, 2  ;;  %s242_s26 = sand.u32 1, %s404_s9  }
  0x31   : > { %s243_s27 = scalar_lea.sflag [#allocation3], %s242_s26 }
  0x32   : > { %p318_p7 = pnand %p321_p4, %p472_p6 }
  0x34   : > { %p319_p8 = pneg %p318_p7 }
  0x36   : > { %399 = dma.done.wait (%p319_p8), %s243_s27, 128  }
  0x37   : > { %401 = vsyncadd (%p319_p8), %s243_s27, 4294967168  ;;  %p12_p9 = scmp.ge.s32.totalorder %s456_s15, 4   ;;  %s534_s9 = smov %s408_s10 }
  0x38   : > { %s535_s10 = smov %s412_s11  ;;  %s536_s11 = smov %s466_s18 }
  0x39   : > { %s537_s12 = smov %s456_s15  ;;  %14 = sbr.rel (!%p12_p9) target bundleno = 3 (0x3), region = 66 }
  0x3e   :  { %249 = vsyncpa [#allocation3], 1 }
  0x3f   :  { %251 = vsyncpa [#allocation3 + $0x1], 1 }

</bundles_post_ra>
